<compile_context>
chip_gen: v7x
topology: tpu7x:2x2x1
jax: 0.10.0
libtpu: 0.0.40
codegen_flags: <defaults>
</compile_context>

<pallas_src>
import functools

import jax
import jax.numpy as jnp
from jax.experimental import pallas as pl
from jax.experimental.pallas import tpu as pltpu

LANES = 128    # TPU lane width; slabs/outputs padded to 128 lanes for lane-dense DMAs
_SUB = 8       # f32 sublane granularity
_SUB_BF16 = 16 # bf16 sublane packing (2 rows per 32-bit sublane)
_TB_MAX = 2048 # batch-tile cap; sweepable (per-grid-step overhead ~0.35 us)


def _round_up(x, m):
    return -(-x // m) * m


# ---------------------------------------------------------------------------
# Kernel
# ---------------------------------------------------------------------------
def _agent_kernel(layout_w, layout_f, dims, state_ref, wslab_ref, fslab_ref, out_ref):
    """Fused HierarchicalAgent forward for one batch tile.

    state_ref : [TB, S]    f32 states
    wslab_ref : [Rw, 128]  bf16 MXU weights (resident across tiles)
    fslab_ref : [Rf, 128]  f32 biases + VPU-path weights (resident across tiles)
    out_ref   : [TB, 128]  lane-dense f32 output slab:
                lanes [0:P)=final action, [P:P+M)=meta probs,
                [P+M]=value, [P+M+1]=selected option (as f32), rest zero.
    """
    S, H, M, P = dims
    f32 = jnp.float32
    bf16 = jnp.bfloat16

    def wblk(name):
        off, r, c = layout_w[name]
        return wslab_ref[off:off + r, 0:c]          # bf16 [r, c]

    def fblk(name):
        off, r, c = layout_f[name]
        return fslab_ref[off:off + r, 0:c]          # f32 [r, c]

    def dot(a, w):
        # bf16 MXU operands, f32 accumulation; elementwise math stays f32.
        return jnp.dot(a.astype(bf16), w, preferred_element_type=f32)

    x = state_ref[...]

    # ---- hierarchical state encoder (3 ReLU layers) ----
    local = jnp.maximum(dot(x, wblk("w1")) + fblk("b1"), 0.0)
    tactical = jnp.maximum(dot(local, wblk("w2")) + fblk("b2"), 0.0)
    strategic = jnp.maximum(dot(tactical, wblk("w3")) + fblk("b3"), 0.0)

    # ---- meta controller (deterministic: softmax probs + argmax option) ----
    logits = dot(strategic, wblk("wm")) + fblk("bm")                      # [TB, M]
    m = jnp.max(logits, axis=-1, keepdims=True)
    e = jnp.exp(logits - m)
    probs = e * pl.reciprocal(jnp.sum(e, axis=-1, keepdims=True), approx=True)

    # argmax = first occurrence of the max (torch.argmax tie-break); reuse softmax `m`
    col = jax.lax.broadcasted_iota(jnp.int32, logits.shape, 1)
    is_max = logits >= m
    opt_idx = jnp.min(jnp.where(is_max, col, M), axis=-1, keepdims=True)  # [TB, 1]
    onehot = (col == opt_idx).astype(f32)                                 # [TB, M]

    # ---- temporal-abstraction gate + decomposer option term ----
    # onehot @ [opt_emb | wdo] is a per-row row-select of w_og; compute as M
    # broadcast-FMAs on the VPU (f32, exact) instead of an MXU push.
    w_og = fblk("w_og")                                                   # [M, H+P]
    og = onehot[:, 0:1] * w_og[0:1, :]
    for mi in range(1, M):
        og = og + onehot[:, mi:mi + 1] * w_og[mi:mi + 1, :]
    gate = jax.nn.sigmoid(og[:, :H])
    dec_opt = og[:, H:H + P]
    exec_feat = tactical * gate

    # ---- execution policy; action head + value head fused into one matmul ----
    h = jnp.maximum(dot(exec_feat, wblk("we1")) + fblk("be1"), 0.0)
    av = dot(h, wblk("we2v")) + fblk("be2v")                              # [TB, P+1]
    primitive = jnp.tanh(av[:, :P])
    value = av[:, P:P + 1]

    # ---- action decomposer: primitive @ wdp (K=N=P=4) as P broadcast-FMAs ----
    wdp = fblk("wdp")                                                     # [P, P]
    dec = dec_opt + fblk("bd")
    for ki in range(P):
        dec = dec + primitive[:, ki:ki + 1] * wdp[ki:ki + 1, :]
    final = jnp.tanh(dec)                                                 # [TB, P]

    # ---- assemble once in-register; single unmasked lane-dense store ----
    tb = final.shape[0]
    pad = LANES - (P + M + 2)
    out_ref[...] = jnp.concatenate(
        [final, probs, value, opt_idx.astype(f32), jnp.zeros((tb, pad), f32)],
        axis=-1)


# ---------------------------------------------------------------------------
# Host-side parameter packing (fuse small heads, pack into two lane-dense slabs)
# ---------------------------------------------------------------------------
def pack_params(p):
    """Fuse small heads and pack weights into a bf16 MXU slab + an f32 slab.

    Host-side fusions (only output columns are concatenated — same math):
      * we2 | wv      -> we2v  [H, P+1]  (action head + value head)
      * be2 | bv      -> be2v  [1, P+1]
      * opt_emb | wdo -> w_og  [M, H+P]  (option gate + decomposer option term)
    Each block is zero-padded to 128 lanes; row offsets are padded to the dtype's
    sublane packing (16 for bf16, 8 for f32) so every in-kernel slice is aligned.
    """
    S, H = p["w1"].shape
    M = p["wm"].shape[1]
    P = p["wdp"].shape[1]
    assert P + M + 2 <= LANES, "output layout (P+M+2 lanes) must fit 128 lanes"

    we2v = jnp.concatenate([p["we2"], p["wv"]], axis=1)        # [H, P+1]
    be2v = jnp.concatenate([p["be2"], p["bv"]], axis=1)        # [1, P+1]
    w_og = jnp.concatenate([p["opt_emb"], p["wdo"]], axis=1)   # [M, H+P]

    def pack(blocks, dtype, sub):
        layout, chunks, off = {}, [], 0
        for name, arr in blocks:
            r, c = arr.shape
            assert c <= LANES, f"block {name!r}: {c} columns > {LANES} lanes"
            rp = _round_up(r, sub)
            chunk = jnp.zeros((rp, LANES), dtype).at[:r, :c].set(arr.astype(dtype))
            chunks.append(chunk)
            layout[name] = (off, r, c)
            off += rp
        return jnp.concatenate(chunks, axis=0), layout

    # bf16 slab: the six MXU matmul weights.
    wslab, layout_w = pack(
        [("w1", p["w1"]), ("w2", p["w2"]), ("w3", p["w3"]),
         ("wm", p["wm"]), ("we1", p["we1"]), ("we2v", we2v)],
        jnp.bfloat16, _SUB_BF16)

    # f32 slab: biases + VPU-path weights (elementwise math stays exact f32).
    fslab, layout_f = pack(
        [("b1", p["b1"]), ("b2", p["b2"]), ("b3", p["b3"]),
         ("bm", p["bm"]), ("be1", p["be1"]), ("be2v", be2v),
         ("w_og", w_og), ("wdp", p["wdp"]), ("bd", p["bd"])],
        jnp.float32, _SUB)

    dims = (S, H, M, P)
    return wslab, layout_w, fslab, layout_f, dims


def _choose_tile(B):
    """Batch tile: amortize per-grid-step overhead, minimize padding waste.

    NOT sized by VMEM (footprint at TB=2048 is a few MiB, far under every
    generation's limit).  For larger batches keep grid >= 2 so v7x's two
    TensorCores both get work under dimension_semantics=("parallel",).
    """
    if B <= 2 * _SUB:                       # tiny batches: single sublane-aligned tile
        return _round_up(max(B, 1), _SUB)
    n_tiles = max(2, -(-B // _TB_MAX))
    return min(_TB_MAX, _round_up(-(-B // n_tiles), _SUB))


def build_forward(layout_w, layout_f, wslab_rows, fslab_rows, dims):
    """Returns a jitted forward(state, wslab, fslab) -> (action, probs, option, value)."""
    S, H, M, P = dims
    kernel = functools.partial(_agent_kernel, layout_w, layout_f, dims)

    @jax.jit
    def forward(state, wslab, fslab):
        B = state.shape[0]
        TB = _choose_tile(B)
        B_pad = _round_up(B, TB)
        state_p = jnp.pad(state, ((0, B_pad - B), (0, 0))) if B_pad != B else state

        out = pl.pallas_call(
            kernel,
            out_shape=jax.ShapeDtypeStruct((B_pad, LANES), jnp.float32),
            grid=(B_pad // TB,),
            in_specs=[
                pl.BlockSpec((TB, S), lambda i: (i, 0)),              # state tile
                pl.BlockSpec((wslab_rows, LANES), lambda i: (0, 0)),  # resident bf16 weights
                pl.BlockSpec((fslab_rows, LANES), lambda i: (0, 0)),  # resident f32 weights
            ],
            out_specs=pl.BlockSpec((TB, LANES), lambda i: (i, 0)),
            compiler_params=pltpu.CompilerParams(
                dimension_semantics=("parallel",)),
        )(state_p, wslab, fslab)

        # Lanes beyond P+M+2 are zero by construction; padded batch rows are dropped.
        final = out[:B, 0:P]
        probs = out[:B, P:P + M]
        value = out[:B, P + M:P + M + 1]
        option = out[:B, P + M + 1:P + M + 2].astype(jnp.int32)
        return final, probs, option, value

    return forward


# ---------------------------------------------------------------------------
# Synthetic parameters + plain-JAX reference
# ---------------------------------------------------------------------------
def make_params(key, state_dim, hidden_dim, meta_action_dim, primitive_action_dim):
    """Deterministic synthetic parameter init (matches module __init__ shapes)."""
    ks = jax.random.split(key, 12)
    s = 0.1

    def w(k, i, o):
        return jax.random.normal(k, (i, o), jnp.float32) * s

    def b(o):
        return jnp.zeros((1, o), jnp.float32)

    return dict(
        w1=w(ks[0], state_dim, hidden_dim), b1=b(hidden_dim),
        w2=w(ks[1], hidden_dim, hidden_dim), b2=b(hidden_dim),
        w3=w(ks[2], hidden_dim, hidden_dim), b3=b(hidden_dim),
        wm=w(ks[3], hidden_dim, meta_action_dim), bm=b(meta_action_dim),
        opt_emb=w(ks[4], meta_action_dim, hidden_dim),
        we1=w(ks[5], hidden_dim, hidden_dim), be1=b(hidden_dim),
        we2=w(ks[6], hidden_dim, primitive_action_dim), be2=b(primitive_action_dim),
        wv=w(ks[7], hidden_dim, 1), bv=b(1),
        wdp=w(ks[8], primitive_action_dim, primitive_action_dim),
        wdo=w(ks[9], meta_action_dim, primitive_action_dim),
        bd=b(primitive_action_dim),
    )


def reference_forward(state, p, mxu_dtype=jnp.float32):
    """Plain-JAX reference of the same forward.

    mxu_dtype=jnp.bfloat16 mirrors the kernel's numerics (bf16 MXU operands, f32
    accumulation, f32 elementwise); jnp.float32 is the module's exact semantics.
    """
    f32 = jnp.float32

    def mm(a, w):
        return jnp.dot(a.astype(mxu_dtype), w.astype(mxu_dtype),
                       preferred_element_type=f32)

    relu = lambda z: jnp.maximum(z, 0.0)
    local = relu(mm(state, p["w1"]) + p["b1"])
    tactical = relu(mm(local, p["w2"]) + p["b2"])
    strategic = relu(mm(tactical, p["w3"]) + p["b3"])
    logits = mm(strategic, p["wm"]) + p["bm"]
    probs = jax.nn.softmax(logits, axis=-1)
    M = logits.shape[-1]
    opt = jnp.argmin(
        jnp.where(logits >= jnp.max(logits, -1, keepdims=True),
                  jnp.arange(M)[None, :], M),
        axis=-1, keepdims=True)
    onehot = jax.nn.one_hot(opt[:, 0], M, dtype=f32)
    gate = jax.nn.sigmoid(onehot @ p["opt_emb"])
    exec_feat = tactical * gate
    h = relu(mm(exec_feat, p["we1"]) + p["be1"])
    primitive = jnp.tanh(mm(h, p["we2"]) + p["be2"])
    value = mm(h, p["wv"]) + p["bv"]
    final = jnp.tanh(primitive @ p["wdp"] + onehot @ p["wdo"] + p["bd"])
    return final, probs, opt.astype(jnp.int32), value


if __name__ == "__main__":
    # small shapes consistent with the module's constructor
    batch = 2
    state_dim = 16
    hidden_dim = 32
    meta_action_dim = 8
    primitive_action_dim = 4

    key = jax.random.PRNGKey(0)
    k_state, k_params = jax.random.split(key)
    state = jax.random.normal(k_state, (batch, state_dim), jnp.float32)
    params = make_params(k_params, state_dim, hidden_dim,
                         meta_action_dim, primitive_action_dim)

    wslab, layout_w, fslab, layout_f, dims = pack_params(params)
    forward = build_forward(layout_w, layout_f, wslab.shape[0], fslab.shape[0], dims)

    action, probs, option, value = forward(state, wslab, fslab)
    jax.block_until_ready((action, probs, option, value))

    # (1) Check against a reference that mirrors the kernel's bf16 MXU numerics.
    ea, ep, eo, ev = reference_forward(state, params, mxu_dtype=jnp.bfloat16)
    assert jnp.allclose(action, ea, atol=5e-3), "final_action mismatch (bf16 ref)"
    assert jnp.allclose(probs, ep, atol=5e-3), "meta probs mismatch (bf16 ref)"
    assert jnp.array_equal(option, eo), "option mismatch (bf16 ref)"
    assert jnp.allclose(value, ev, atol=5e-3), "value mismatch (bf16 ref)"

    # (2) Module-semantics check vs. full-f32 reference (tolerance loosened for the
    #     bf16 MXU operands). Skipped only if bf16 rounding flips the argmax option,
    #     in which case (1) already certifies the kernel matches its numeric contract.
    ra, rp, ro, rv = reference_forward(state, params, mxu_dtype=jnp.float32)
    if jnp.array_equal(eo, ro):
        assert jnp.array_equal(option, ro), "option mismatch (f32 ref)"
        assert jnp.allclose(action, ra, atol=2e-2), "final_action mismatch (f32 ref)"
        assert jnp.allclose(probs, rp, atol=2e-2), "meta probs mismatch (f32 ref)"
        assert jnp.allclose(value, rv, atol=2e-2), "value mismatch (f32 ref)"

    print("KERNEL_OK")
</pallas_src>

<mosaic_0001>
module attributes {stable_mosaic.version = 11 : i64} {
  func.func @_agent_kernel(%arg0: i32, %arg1: memref<8x16xf32, #tpu.memory_space<vmem>>, %arg2: memref<176x128xbf16, #tpu.memory_space<vmem>>, %arg3: memref<72x128xf32, #tpu.memory_space<vmem>>, %arg4: memref<8x128xf32, #tpu.memory_space<vmem>>) attributes {dimension_semantics = [#tpu.dimension_semantics<parallel>], iteration_bounds = array<i64: 1>, scalar_prefetch = 0 : i64, scratch_operands = 0 : i64, tpu.core_type = #tpu.core_type<tc>, window_params = [{transform_indices = @transform_0, window_bounds = array<i64: 8, 16>}, {pipeline_mode = #tpu.pipeline_mode<synchronous>, transform_indices = @transform_1, window_bounds = array<i64: 176, 128>}, {pipeline_mode = #tpu.pipeline_mode<synchronous>, transform_indices = @transform_2, window_bounds = array<i64: 72, 128>}, {transform_indices = @transform_3, window_bounds = array<i64: 8, 128>}]} {
    %c0 = arith.constant 0 : index
    %c0_0 = arith.constant 0 : index
    %0 = vector.load %arg1[%c0, %c0_0] : memref<8x16xf32, #tpu.memory_space<vmem>>, vector<8x16xf32>
    %c0_1 = arith.constant 0 : index
    %c0_2 = arith.constant 0 : index
    %1 = vector.load %arg2[%c0_1, %c0_2] : memref<176x128xbf16, #tpu.memory_space<vmem>>, vector<16x32xbf16>
    %2 = arith.truncf %0 : vector<8x16xf32> to vector<8x16xbf16>
    %cst = arith.constant dense<0.000000e+00> : vector<8x32xf32>
    %3 = tpu.matmul %2, %1, %cst {dimension_numbers = #tpu.dot_dimension_numbers<[1], [0], [0], [1], [0, 0, 1, 1], [], []>} : vector<8x16xbf16>, vector<16x32xbf16>, vector<8x32xf32> -> vector<8x32xf32>
    %c0_3 = arith.constant 0 : index
    %c0_4 = arith.constant 0 : index
    %4 = vector.load %arg3[%c0_3, %c0_4] : memref<72x128xf32, #tpu.memory_space<vmem>>, vector<1x32xf32>
    %5 = vector.broadcast %4 : vector<1x32xf32> to vector<8x32xf32>
    %6 = arith.addf %3, %5 : vector<8x32xf32>
    %cst_5 = arith.constant 0.000000e+00 : f32
    %7 = vector.broadcast %cst_5 : f32 to vector<8x32xf32>
    %8 = arith.maximumf %6, %7 : vector<8x32xf32>
    %c16 = arith.constant 16 : index
    %c0_6 = arith.constant 0 : index
    %9 = vector.load %arg2[%c16, %c0_6] : memref<176x128xbf16, #tpu.memory_space<vmem>>, vector<32x32xbf16>
    %10 = arith.truncf %8 : vector<8x32xf32> to vector<8x32xbf16>
    %cst_7 = arith.constant dense<0.000000e+00> : vector<8x32xf32>
    %11 = tpu.matmul %10, %9, %cst_7 {dimension_numbers = #tpu.dot_dimension_numbers<[1], [0], [0], [1], [0, 0, 1, 1], [], []>} : vector<8x32xbf16>, vector<32x32xbf16>, vector<8x32xf32> -> vector<8x32xf32>
    %c8 = arith.constant 8 : index
    %c0_8 = arith.constant 0 : index
    %12 = vector.load %arg3[%c8, %c0_8] : memref<72x128xf32, #tpu.memory_space<vmem>>, vector<1x32xf32>
    %13 = vector.broadcast %12 : vector<1x32xf32> to vector<8x32xf32>
    %14 = arith.addf %11, %13 : vector<8x32xf32>
    %cst_9 = arith.constant 0.000000e+00 : f32
    %15 = vector.broadcast %cst_9 : f32 to vector<8x32xf32>
    %16 = arith.maximumf %14, %15 : vector<8x32xf32>
    %c48 = arith.constant 48 : index
    %c0_10 = arith.constant 0 : index
    %17 = vector.load %arg2[%c48, %c0_10] : memref<176x128xbf16, #tpu.memory_space<vmem>>, vector<32x32xbf16>
    %18 = arith.truncf %16 : vector<8x32xf32> to vector<8x32xbf16>
    %cst_11 = arith.constant dense<0.000000e+00> : vector<8x32xf32>
    %19 = tpu.matmul %18, %17, %cst_11 {dimension_numbers = #tpu.dot_dimension_numbers<[1], [0], [0], [1], [0, 0, 1, 1], [], []>} : vector<8x32xbf16>, vector<32x32xbf16>, vector<8x32xf32> -> vector<8x32xf32>
    %c16_12 = arith.constant 16 : index
    %c0_13 = arith.constant 0 : index
    %20 = vector.load %arg3[%c16_12, %c0_13] : memref<72x128xf32, #tpu.memory_space<vmem>>, vector<1x32xf32>
    %21 = vector.broadcast %20 : vector<1x32xf32> to vector<8x32xf32>
    %22 = arith.addf %19, %21 : vector<8x32xf32>
    %cst_14 = arith.constant 0.000000e+00 : f32
    %23 = vector.broadcast %cst_14 : f32 to vector<8x32xf32>
    %24 = arith.maximumf %22, %23 : vector<8x32xf32>
    %c80 = arith.constant 80 : index
    %c0_15 = arith.constant 0 : index
    %25 = vector.load %arg2[%c80, %c0_15] : memref<176x128xbf16, #tpu.memory_space<vmem>>, vector<32x8xbf16>
    %26 = arith.truncf %24 : vector<8x32xf32> to vector<8x32xbf16>
    %cst_16 = arith.constant dense<0.000000e+00> : vector<8x8xf32>
    %27 = tpu.matmul %26, %25, %cst_16 {dimension_numbers = #tpu.dot_dimension_numbers<[1], [0], [0], [1], [0, 0, 1, 1], [], []>} : vector<8x32xbf16>, vector<32x8xbf16>, vector<8x8xf32> -> vector<8x8xf32>
    %c24 = arith.constant 24 : index
    %c0_17 = arith.constant 0 : index
    %28 = vector.load %arg3[%c24, %c0_17] : memref<72x128xf32, #tpu.memory_space<vmem>>, vector<1x8xf32>
    %29 = vector.broadcast %28 : vector<1x8xf32> to vector<8x8xf32>
    %30 = arith.addf %27, %29 : vector<8x8xf32>
    %cst_18 = arith.constant dense<0xFF800000> : vector<8xf32>
    %31 = vector.multi_reduction <maximumf>, %30, %cst_18 [1] : vector<8x8xf32> to vector<8xf32>
    %32 = vector.shape_cast %31 : vector<8xf32> to vector<8x1xf32>
    %33 = vector.broadcast %32 : vector<8x1xf32> to vector<8x8xf32>
    %34 = arith.subf %30, %33 : vector<8x8xf32>
    %35 = math.exp %34 : vector<8x8xf32>
    %cst_19 = arith.constant dense<0.000000e+00> : vector<8xf32>
    %36 = vector.multi_reduction <add>, %35, %cst_19 [1] : vector<8x8xf32> to vector<8xf32>
    %37 = vector.shape_cast %36 : vector<8xf32> to vector<8x1xf32>
    %38 = tpu.reciprocal %37 {approx = true} : vector<8x1xf32> -> vector<8x1xf32>
    %39 = vector.broadcast %38 : vector<8x1xf32> to vector<8x8xf32>
    %40 = arith.mulf %35, %39 : vector<8x8xf32>
    %41 = tpu.iota {dimensions = array<i32: 1>} : vector<8x8xi32>
    %42 = vector.broadcast %32 : vector<8x1xf32> to vector<8x8xf32>
    %43 = arith.cmpf oge, %30, %42 : vector<8x8xf32>
    %c8_i32 = arith.constant 8 : i32
    %44 = vector.broadcast %c8_i32 : i32 to vector<8x8xi32>
    %45 = arith.select %43, %41, %44 : vector<8x8xi1>, vector<8x8xi32>
    %cst_20 = arith.constant dense<2147483647> : vector<8xi32>
    %46 = vector.multi_reduction <minsi>, %45, %cst_20 [1] : vector<8x8xi32> to vector<8xi32>
    %47 = vector.shape_cast %46 : vector<8xi32> to vector<8x1xi32>
    %48 = vector.broadcast %47 : vector<8x1xi32> to vector<8x8xi32>
    %49 = arith.cmpi eq, %41, %48 : vector<8x8xi32>
    %50 = arith.extui %49 : vector<8x8xi1> to vector<8x8xi32>
    %51 = arith.sitofp %50 : vector<8x8xi32> to vector<8x8xf32>
    %c48_21 = arith.constant 48 : index
    %c0_22 = arith.constant 0 : index
    %52 = vector.load %arg3[%c48_21, %c0_22] : memref<72x128xf32, #tpu.memory_space<vmem>>, vector<8x36xf32>
    %53 = vector.extract_strided_slice %51 {offsets = [0, 0], sizes = [8, 1], strides = [1, 1]} : vector<8x8xf32> to vector<8x1xf32>
    %54 = vector.extract_strided_slice %52 {offsets = [0, 0], sizes = [1, 36], strides = [1, 1]} : vector<8x36xf32> to vector<1x36xf32>
    %55 = vector.broadcast %53 : vector<8x1xf32> to vector<8x36xf32>
    %56 = vector.broadcast %54 : vector<1x36xf32> to vector<8x36xf32>
    %57 = arith.mulf %55, %56 : vector<8x36xf32>
    %58 = vector.extract_strided_slice %51 {offsets = [0, 1], sizes = [8, 1], strides = [1, 1]} : vector<8x8xf32> to vector<8x1xf32>
    %59 = vector.extract_strided_slice %52 {offsets = [1, 0], sizes = [1, 36], strides = [1, 1]} : vector<8x36xf32> to vector<1x36xf32>
    %60 = vector.broadcast %58 : vector<8x1xf32> to vector<8x36xf32>
    %61 = vector.broadcast %59 : vector<1x36xf32> to vector<8x36xf32>
    %62 = arith.mulf %60, %61 : vector<8x36xf32>
    %63 = arith.addf %57, %62 : vector<8x36xf32>
    %64 = vector.extract_strided_slice %51 {offsets = [0, 2], sizes = [8, 1], strides = [1, 1]} : vector<8x8xf32> to vector<8x1xf32>
    %65 = vector.extract_strided_slice %52 {offsets = [2, 0], sizes = [1, 36], strides = [1, 1]} : vector<8x36xf32> to vector<1x36xf32>
    %66 = vector.broadcast %64 : vector<8x1xf32> to vector<8x36xf32>
    %67 = vector.broadcast %65 : vector<1x36xf32> to vector<8x36xf32>
    %68 = arith.mulf %66, %67 : vector<8x36xf32>
    %69 = arith.addf %63, %68 : vector<8x36xf32>
    %70 = vector.extract_strided_slice %51 {offsets = [0, 3], sizes = [8, 1], strides = [1, 1]} : vector<8x8xf32> to vector<8x1xf32>
    %71 = vector.extract_strided_slice %52 {offsets = [3, 0], sizes = [1, 36], strides = [1, 1]} : vector<8x36xf32> to vector<1x36xf32>
    %72 = vector.broadcast %70 : vector<8x1xf32> to vector<8x36xf32>
    %73 = vector.broadcast %71 : vector<1x36xf32> to vector<8x36xf32>
    %74 = arith.mulf %72, %73 : vector<8x36xf32>
    %75 = arith.addf %69, %74 : vector<8x36xf32>
    %76 = vector.extract_strided_slice %51 {offsets = [0, 4], sizes = [8, 1], strides = [1, 1]} : vector<8x8xf32> to vector<8x1xf32>
    %77 = vector.extract_strided_slice %52 {offsets = [4, 0], sizes = [1, 36], strides = [1, 1]} : vector<8x36xf32> to vector<1x36xf32>
    %78 = vector.broadcast %76 : vector<8x1xf32> to vector<8x36xf32>
    %79 = vector.broadcast %77 : vector<1x36xf32> to vector<8x36xf32>
    %80 = arith.mulf %78, %79 : vector<8x36xf32>
    %81 = arith.addf %75, %80 : vector<8x36xf32>
    %82 = vector.extract_strided_slice %51 {offsets = [0, 5], sizes = [8, 1], strides = [1, 1]} : vector<8x8xf32> to vector<8x1xf32>
    %83 = vector.extract_strided_slice %52 {offsets = [5, 0], sizes = [1, 36], strides = [1, 1]} : vector<8x36xf32> to vector<1x36xf32>
    %84 = vector.broadcast %82 : vector<8x1xf32> to vector<8x36xf32>
    %85 = vector.broadcast %83 : vector<1x36xf32> to vector<8x36xf32>
    %86 = arith.mulf %84, %85 : vector<8x36xf32>
    %87 = arith.addf %81, %86 : vector<8x36xf32>
    %88 = vector.extract_strided_slice %51 {offsets = [0, 6], sizes = [8, 1], strides = [1, 1]} : vector<8x8xf32> to vector<8x1xf32>
    %89 = vector.extract_strided_slice %52 {offsets = [6, 0], sizes = [1, 36], strides = [1, 1]} : vector<8x36xf32> to vector<1x36xf32>
    %90 = vector.broadcast %88 : vector<8x1xf32> to vector<8x36xf32>
    %91 = vector.broadcast %89 : vector<1x36xf32> to vector<8x36xf32>
    %92 = arith.mulf %90, %91 : vector<8x36xf32>
    %93 = arith.addf %87, %92 : vector<8x36xf32>
    %94 = vector.extract_strided_slice %51 {offsets = [0, 7], sizes = [8, 1], strides = [1, 1]} : vector<8x8xf32> to vector<8x1xf32>
    %95 = vector.extract_strided_slice %52 {offsets = [7, 0], sizes = [1, 36], strides = [1, 1]} : vector<8x36xf32> to vector<1x36xf32>
    %96 = vector.broadcast %94 : vector<8x1xf32> to vector<8x36xf32>
    %97 = vector.broadcast %95 : vector<1x36xf32> to vector<8x36xf32>
    %98 = arith.mulf %96, %97 : vector<8x36xf32>
    %99 = arith.addf %93, %98 : vector<8x36xf32>
    %100 = vector.extract_strided_slice %99 {offsets = [0, 0], sizes = [8, 32], strides = [1, 1]} : vector<8x36xf32> to vector<8x32xf32>
    %101 = arith.negf %100 : vector<8x32xf32>
    %102 = math.exp %101 : vector<8x32xf32>
    %cst_23 = arith.constant 1.000000e+00 : f32
    %103 = vector.broadcast %cst_23 : f32 to vector<8x32xf32>
    %104 = arith.addf %103, %102 : vector<8x32xf32>
    %105 = arith.divf %103, %104 : vector<8x32xf32>
    %106 = vector.extract_strided_slice %99 {offsets = [0, 32], sizes = [8, 4], strides = [1, 1]} : vector<8x36xf32> to vector<8x4xf32>
    %107 = arith.mulf %16, %105 : vector<8x32xf32>
    %c112 = arith.constant 112 : index
    %c0_24 = arith.constant 0 : index
    %108 = vector.load %arg2[%c112, %c0_24] : memref<176x128xbf16, #tpu.memory_space<vmem>>, vector<32x32xbf16>
    %109 = arith.truncf %107 : vector<8x32xf32> to vector<8x32xbf16>
    %cst_25 = arith.constant dense<0.000000e+00> : vector<8x32xf32>
    %110 = tpu.matmul %109, %108, %cst_25 {dimension_numbers = #tpu.dot_dimension_numbers<[1], [0], [0], [1], [0, 0, 1, 1], [], []>} : vector<8x32xbf16>, vector<32x32xbf16>, vector<8x32xf32> -> vector<8x32xf32>
    %c32 = arith.constant 32 : index
    %c0_26 = arith.constant 0 : index
    %111 = vector.load %arg3[%c32, %c0_26] : memref<72x128xf32, #tpu.memory_space<vmem>>, vector<1x32xf32>
    %112 = vector.broadcast %111 : vector<1x32xf32> to vector<8x32xf32>
    %113 = arith.addf %110, %112 : vector<8x32xf32>
    %cst_27 = arith.constant 0.000000e+00 : f32
    %114 = vector.broadcast %cst_27 : f32 to vector<8x32xf32>
    %115 = arith.maximumf %113, %114 : vector<8x32xf32>
    %c144 = arith.constant 144 : index
    %c0_28 = arith.constant 0 : index
    %116 = vector.load %arg2[%c144, %c0_28] : memref<176x128xbf16, #tpu.memory_space<vmem>>, vector<32x5xbf16>
    %117 = arith.truncf %115 : vector<8x32xf32> to vector<8x32xbf16>
    %cst_29 = arith.constant dense<0.000000e+00> : vector<8x5xf32>
    %118 = tpu.matmul %117, %116, %cst_29 {dimension_numbers = #tpu.dot_dimension_numbers<[1], [0], [0], [1], [0, 0, 1, 1], [], []>} : vector<8x32xbf16>, vector<32x5xbf16>, vector<8x5xf32> -> vector<8x5xf32>
    %c40 = arith.constant 40 : index
    %c0_30 = arith.constant 0 : index
    %119 = vector.load %arg3[%c40, %c0_30] : memref<72x128xf32, #tpu.memory_space<vmem>>, vector<1x5xf32>
    %120 = vector.broadcast %119 : vector<1x5xf32> to vector<8x5xf32>
    %121 = arith.addf %118, %120 : vector<8x5xf32>
    %122 = vector.extract_strided_slice %121 {offsets = [0, 0], sizes = [8, 4], strides = [1, 1]} : vector<8x5xf32> to vector<8x4xf32>
    %123 = math.tanh %122 : vector<8x4xf32>
    %124 = vector.extract_strided_slice %121 {offsets = [0, 4], sizes = [8, 1], strides = [1, 1]} : vector<8x5xf32> to vector<8x1xf32>
    %c56 = arith.constant 56 : index
    %c0_31 = arith.constant 0 : index
    %125 = vector.load %arg3[%c56, %c0_31] : memref<72x128xf32, #tpu.memory_space<vmem>>, vector<4x4xf32>
    %c64 = arith.constant 64 : index
    %c0_32 = arith.constant 0 : index
    %126 = vector.load %arg3[%c64, %c0_32] : memref<72x128xf32, #tpu.memory_space<vmem>>, vector<1x4xf32>
    %127 = vector.broadcast %126 : vector<1x4xf32> to vector<8x4xf32>
    %128 = arith.addf %106, %127 : vector<8x4xf32>
    %129 = vector.extract_strided_slice %123 {offsets = [0, 0], sizes = [8, 1], strides = [1, 1]} : vector<8x4xf32> to vector<8x1xf32>
    %130 = vector.extract_strided_slice %125 {offsets = [0, 0], sizes = [1, 4], strides = [1, 1]} : vector<4x4xf32> to vector<1x4xf32>
    %131 = vector.broadcast %129 : vector<8x1xf32> to vector<8x4xf32>
    %132 = vector.broadcast %130 : vector<1x4xf32> to vector<8x4xf32>
    %133 = arith.mulf %131, %132 : vector<8x4xf32>
    %134 = arith.addf %128, %133 : vector<8x4xf32>
    %135 = vector.extract_strided_slice %123 {offsets = [0, 1], sizes = [8, 1], strides = [1, 1]} : vector<8x4xf32> to vector<8x1xf32>
    %136 = vector.extract_strided_slice %125 {offsets = [1, 0], sizes = [1, 4], strides = [1, 1]} : vector<4x4xf32> to vector<1x4xf32>
    %137 = vector.broadcast %135 : vector<8x1xf32> to vector<8x4xf32>
    %138 = vector.broadcast %136 : vector<1x4xf32> to vector<8x4xf32>
    %139 = arith.mulf %137, %138 : vector<8x4xf32>
    %140 = arith.addf %134, %139 : vector<8x4xf32>
    %141 = vector.extract_strided_slice %123 {offsets = [0, 2], sizes = [8, 1], strides = [1, 1]} : vector<8x4xf32> to vector<8x1xf32>
    %142 = vector.extract_strided_slice %125 {offsets = [2, 0], sizes = [1, 4], strides = [1, 1]} : vector<4x4xf32> to vector<1x4xf32>
    %143 = vector.broadcast %141 : vector<8x1xf32> to vector<8x4xf32>
    %144 = vector.broadcast %142 : vector<1x4xf32> to vector<8x4xf32>
    %145 = arith.mulf %143, %144 : vector<8x4xf32>
    %146 = arith.addf %140, %145 : vector<8x4xf32>
    %147 = vector.extract_strided_slice %123 {offsets = [0, 3], sizes = [8, 1], strides = [1, 1]} : vector<8x4xf32> to vector<8x1xf32>
    %148 = vector.extract_strided_slice %125 {offsets = [3, 0], sizes = [1, 4], strides = [1, 1]} : vector<4x4xf32> to vector<1x4xf32>
    %149 = vector.broadcast %147 : vector<8x1xf32> to vector<8x4xf32>
    %150 = vector.broadcast %148 : vector<1x4xf32> to vector<8x4xf32>
    %151 = arith.mulf %149, %150 : vector<8x4xf32>
    %152 = arith.addf %146, %151 : vector<8x4xf32>
    %153 = math.tanh %152 : vector<8x4xf32>
    %154 = arith.sitofp %47 : vector<8x1xi32> to vector<8x1xf32>
    %cst_33 = arith.constant 0.000000e+00 : f32
    %155 = vector.broadcast %cst_33 : f32 to vector<8x114xf32>
    %156 = tpu.concatenate %153, %40, %124, %154, %155 in 1 : vector<8x4xf32>, vector<8x8xf32>, vector<8x1xf32>, vector<8x1xf32>, vector<8x114xf32> -> vector<8x128xf32>
    %c0_34 = arith.constant 0 : index
    %c0_35 = arith.constant 0 : index
    %157 = vector.load %arg4[%c0_34, %c0_35] : memref<8x128xf32, #tpu.memory_space<vmem>>, vector<8x128xf32>
    tpu.vector_store %arg4[%c0_34, %c0_35], %156 {strides = array<i32>} : memref<8x128xf32, #tpu.memory_space<vmem>>, vector<8x128xf32>,
    return
  }
  func.func @transform_0(%arg0: i32) -> (i32, i32) {
    %c0_i32 = arith.constant 0 : i32
    %c0_i32_0 = arith.constant 0 : i32
    return %arg0, %c0_i32 : i32, i32
  }
  func.func @transform_1(%arg0: i32) -> (i32, i32) {
    %c0_i32 = arith.constant 0 : i32
    %c0_i32_0 = arith.constant 0 : i32
    %c0_i32_1 = arith.constant 0 : i32
    return %c0_i32, %c0_i32_0 : i32, i32
  }
  func.func @transform_2(%arg0: i32) -> (i32, i32) {
    %c0_i32 = arith.constant 0 : i32
    %c0_i32_0 = arith.constant 0 : i32
    %c0_i32_1 = arith.constant 0 : i32
    return %c0_i32, %c0_i32_0 : i32, i32
  }
  func.func @transform_3(%arg0: i32) -> (i32, i32) {
    %c0_i32 = arith.constant 0 : i32
    %c0_i32_0 = arith.constant 0 : i32
    return %arg0, %c0_i32 : i32, i32
  }
}

</mosaic_0001>

<bundles_post_ra>
// kernel: forward.1
= control target key start
LH: loop header
LB: loop body
LE: loop exit
PB: predicated region body
PF: predicated region fallthrough
CT: control target
= control target key end

     0   :  { %8 = vsyncpa [#allocation3], 0  ;;  %s1000_s0 = inlined_call_operand.vmem [shape: f32[8,16], index: 0, kind: input, shape index: {}]   ;;  %s1001_s1 = inlined_call_operand.hbm [shape: bf16[176,128], index: 1, kind: input, shape index: {}]   ;;  %s1002_s2 = inlined_call_operand.hbm [shape: f32[72,128], index: 2, kind: input, shape index: {}]   ;;  %s1003_s3 = inlined_call_operand.vmem [shape: f32[8,128], index: 3, kind: output, shape index: {}]  }
   0x1   :  { %9 = vsyncpa [#allocation5], 0  ;;  %s843_s12 = smov [#allocation2]   ;;  %s795_s16 = scalar_lea.hbm %s1001_s1, 1408 }
   0x2   :  { %s17_s13 = sshll.u32 %s843_s12, 4  ;;  %p796_p0 = scmp.ne.s32.totalorder %s1001_s1, %s795_s16  ;;  %s18_s13 = int_to_ptr.vmem [resolvable:$true] %s17_s13 }
   0x3   :  { %p799_p1 = scmp.lt.u32.totalorder %s795_s16, %s1001_s1 }
   0x5   :  { %p801_p2 = pnand %p799_p1, %p796_p0 }
   0x7   :  { %804 = shalt.err (!%p801_p2)
}
   0x8   :  { %s805_s21 = scalar_lea.vmem %s18_s13, 1408  ;;  %p810_p4 = scmp.lt.s32.totalorder %s18_s13, %s18_s13 }
   0x9   :  { %p806_p3 = scmp.ne.s32.totalorder %s18_s13, %s805_s21  ;;  %p811_p5 = scmp.lt.s32.totalorder %s805_s21, %s805_s21 }
   0xb   :  { %p812_p6 = por %p811_p5, %p810_p4 }
   0xd   :  { %p813_p7 = pnand %p812_p6, %p806_p3 }
   0xf   :  { %816 = shalt.err (!%p813_p7)
}
  0x10   :  { %s844_s22 = smov 64   ;;  %s845_s23 = smov 4  }
  0x11   :  { %23 = dma.hbm_to_vmem [thread:$0]  %s1001_s1, 1408, %s18_s13, [#allocation3], %s844_s22, %s844_s22, %s845_s23  }
  0x12   :  { %s846_s26 = smov [#allocation4]   ;;  %s817_s30 = scalar_lea.hbm %s1002_s2, 1152 }
  0x13   :  { %s29_s27 = sshll.u32 %s846_s26, 4  ;;  %p818_p8 = scmp.ne.s32.totalorder %s1002_s2, %s817_s30  ;;  %s30_s27 = int_to_ptr.vmem [resolvable:$true] %s29_s27 }
  0x14   :  { %p821_p9 = scmp.lt.u32.totalorder %s817_s30, %s1002_s2 }
  0x16   :  { %p823_p10 = pnand %p821_p9, %p818_p8 }
  0x18   :  { %826 = shalt.err (!%p823_p10)
}
  0x19   :  { %s827_s8 = scalar_lea.vmem %s30_s27, 1152  ;;  %p832_p12 = scmp.lt.s32.totalorder %s30_s27, %s30_s27 }
  0x1a   :  { %p828_p11 = scmp.ne.s32.totalorder %s30_s27, %s827_s8  ;;  %p833_p13 = scmp.lt.s32.totalorder %s827_s8, %s827_s8 }
  0x1c   :  { %p834_p0 = por %p833_p13, %p832_p12 }
  0x1e   :  { %p835_p1 = pnand %p834_p0, %p828_p11 }
  0x20   :  { %838 = shalt.err (!%p835_p1)
}
  0x21   :  { %s847_s1 = smov 128   ;;  %s848_s9 = smov 8  }
  0x22   :  { %35 = dma.hbm_to_vmem [thread:$0]  %s1002_s2, 1152, %s30_s27, [#allocation5], %s847_s1, %s847_s1, %s848_s9  }
  0x23   :  { %839 = dma.done.wait [#allocation3], 1408  }
  0x24   :  { %840 = vsyncadd [#allocation3], 4294965888 }
  0x25   :  { %841 = dma.done.wait [#allocation5], 1152  }
  0x26   :  { %842 = vsyncadd [#allocation5], 4294966144  ;;  %v849_v0 = vmov 0.0   ;;  %vm850_vm0 = vmmov 0   ;;  %v772_v1 = vld [vmem:[#allocation2] sm:$0xff]   ;;  %vm58_vm1 = vcmask 130048   ;;  %v313_v41 = vlaneseq }
  0x27   :  { %695 = vmatprep.subr.bf16.mxu0 %v849_v0  ;;  %697 = vmatprep.mubr.msk.bf16.mxu0 %vm850_vm0, %v849_v0  ;;  %v43_v2 = vld [vmem:[%s1000_s0] sm:$0xff]  ;;  %v773_v4 = vld [vmem:[#allocation2 + $0x8] sm:$0xff]   ;;  %v774_v5 = vld [vmem:[#allocation2 + $0x10] sm:$0xff]   ;;  %vm125_vm2 = vcmask 261120   ;;  %vm301_vm3 = vcmask 64512   ;;  %v851_v52 = vmov 1  }
  0x28   :  { %701 = vmatprep.subr.bf16.mxu1 %v849_v0  ;;  %705 = vmatprep.mubr.msk.bf16.mxu1 %vm850_vm0, %v849_v0  ;;  %v46_v3 = vpack.c.bf16 %v43_v2, %v43_v2  ;;  %v775_v6 = vld [vmem:[#allocation2 + $0x18] sm:$0xff]   ;;  %v776_v15 = vld [vmem:[#allocation2 + $0x20] sm:$0xff]   ;;  %v777_v16 = vld [vmem:[#allocation2 + $0x28] sm:$0xff]   ;;  %v314_v42 = vand.u32 127, %v313_v41  ;;  %v852_v53 = vmov 0   ;;  %v853_v60 = vmov 2  }
  0x29   :  { %696 = vmatpush3.bf16.msra.mxu0 %v772_v1  ;;  %702 = vmatpush3.bf16.msra.mxu1 %v773_v4  ;;  %v652_v7 = vld [vmem:[#allocation4] ss:$0 sm:$0xff]  ;;  %v655_v17 = vld [vmem:[#allocation4 + $0x8] ss:$0 sm:$0xff]  ;;  %v778_v25 = vld [vmem:[#allocation2 + $0x30] sm:$0xff]   ;;  %v854_v61 = vmov 3  }
  0x2a   :  { %709 = vmatprep.subr.bf16.mxu0 %v849_v0  ;;  %703 = vmatprep.subr.bf16.mxu1 %v849_v0  ;;  %v659_v26 = vld [vmem:[#allocation4 + $0x10] ss:$0 sm:$0xff]  ;;  %v663_v34 = vld [vmem:[#allocation4 + $0x18] ss:$0 sm:$0xff]  ;;  %v855_v62 = vmov 4   ;;  %v856_v63 = vmov 5  }
  0x2b   :  { %760 = vset.pattern.permute.xlu0 %v851_v52  ;;  %759 = vset.pattern.permute.xlu1 %v852_v53  ;;  %v857_v1 = vmov 6   ;;  %v858_v2 = vmov 7   ;;  %v780_v4 = vld [vmem:[#allocation2 + $0x40] sm:$0xff]   ;;  %s859_s0 = smov 32   ;;  %s860_s2 = smov 96   ;;  %vm637_vm7 = vcmask 31744  }
  0x2c   :  { %698 = vmatmul.mubr.msk.bf16.vlgmr.msra.gmra.mrb[0].mxu0 %vm58_vm1, %v46_v3  ;;  %v779_v3 = vld [vmem:[#allocation2 + $0x38] sm:$0xff]   ;;  %vm639_vm8 = vcmask 97280   ;;  %vm641_vm9 = vcmask 105472   ;;  %vm643_vm10 = vcmask 113664  }
  0x2d   :  { %713 = vmatprep.mubr.msk.bf16.mxu0 %vm850_vm0, %v849_v0  ;;  %704 = vmatpush3.bf16.msra.mxu1 %v774_v5  ;;  %v781_v5 = vld [vmem:[#allocation2 + $0x48] sm:$0xff]  }
  0x2e   :  { %717 = vmatprep.subr.bf16.mxu1 %v849_v0  ;;  %710 = vmatpush3.bf16.msra.mxu0 %v775_v6 }
  0x2f   :  { %711 = vmatprep.subr.bf16.mxu0 %v849_v0 }
  0x32   :  { %712 = vmatpush3.bf16.msra.mxu0 %v776_v15 }
  0x33   :  { %725 = vmatprep.subr.bf16.mxu0 %v849_v0 }
  0xff   :  { %v96_v8 = vpop.f32.mrb[0].mxu0 }
 0x100   :  { %v97_v9 = vadd.f32 %v652_v7, %v96_v8  ;;  %v699_v10 = vpop.f32.mrb[1].mxu0  ;;  %v955_v7 = vshrl.u32 %v313_v41, 7 }
 0x101   :  { %v99_v11 = vpop.f32.mrb[2].mxu0 }
 0x102   :  { %v102_v12 = vmax.f32 %v97_v9, 0.0  ;;  %v700_v13 = vpop.f32.mrb[3].mxu0  ;;  %v352_v9 = vsub.s32 1, %v955_v7  ;;  %v343_v10 = vsub.s32 0, %v955_v7  ;;  %v335_v11 = vld [vmem:[#allocation4 + $0x30] sm:$0xff] }
 0x103   :  { %v362_v13 = vsub.s32 2, %v955_v7 }
 0x104   :  { %v107_v14 = vpack.c.bf16 %v102_v12, %v102_v12  ;;  %v344_v15 = vrot.slane %v335_v11, %v343_v10 }
 0x106   :  { %706 = vmatmul.mubr.msk.bf16.vlgmr.msra.gmra.mrb[0].mxu1 %vm125_vm2, %v107_v14  ;;  %v353_v14 = vrot.slane %v335_v11, %v352_v9 }
 0x107   :  { %721 = vmatprep.mubr.msk.bf16.mxu1 %vm850_vm0, %v849_v0  ;;  %718 = vmatpush3.bf16.msra.mxu1 %v777_v16 }
 0x108   :  { %719 = vmatprep.subr.bf16.mxu1 %v849_v0 }
 0x10b   :  { %720 = vmatpush3.bf16.msra.mxu1 %v778_v25 }
 0x10c   :  { %733 = vmatprep.subr.bf16.mxu1 %v849_v0 }
 0x1d9   :  { %v163_v18 = vpop.f32.mrb[0].mxu1 }
 0x1da   :  { %v164_v19 = vadd.f32 %v655_v17, %v163_v18  ;;  %v707_v20 = vpop.f32.mrb[1].mxu1  ;;  %v363_v17 = vrot.slane %v335_v11, %v362_v13  ;;  %v382_v18 = vsub.s32 4, %v955_v7 }
 0x1db   :  { %v166_v21 = vpop.f32.mrb[2].mxu1 }
 0x1dc   :  { %v927_v22 = vmax.f32 %v164_v19, 0.0  ;;  %v708_v23 = vpop.f32.mrb[3].mxu1 }
 0x1de   :  { %v174_v24 = vpack.c.bf16 %v927_v22, %v927_v22 }
 0x1e0   :  { %714 = vmatmul.mubr.msk.bf16.vlgmr.msra.gmra.mrb[4].mxu0 %vm125_vm2, %v174_v24  ;;  %v392_v24 = vsub.s32 5, %v955_v7 }
 0x1e1   :  { %729 = vmatprep.mubr.msk.bf16.mxu0 %vm850_vm0, %v849_v0  ;;  %726 = vmatpush3.bf16.msra.mxu0 %v779_v3 }
 0x1e2   :  { %727 = vmatprep.subr.bf16.mxu0 %v849_v0 }
 0x1e5   :  { %728 = vmatpush3.bf16.msra.mxu0 %v780_v4  ;;  %v673_v4 = vld [vmem:[#allocation4 + $0x28] ss:$0 sm:$0xff] }
 0x2b3   :  { %v229_v27 = vpop.f32.mrb[4].mxu0 }
 0x2b4   :  { %v230_v28 = vadd.f32 %v659_v26, %v229_v27  ;;  %v715_v29 = vpop.f32.mrb[5].mxu0  ;;  %v383_v26 = vrot.slane %v335_v11, %v382_v18  ;;  %v402_v27 = vsub.s32 6, %v955_v7 }
 0x2b5   :  { %v232_v30 = vpop.f32.mrb[6].mxu0 }
 0x2b6   :  { %v235_v31 = vmax.f32 %v230_v28, 0.0  ;;  %v716_v32 = vpop.f32.mrb[7].mxu0 }
 0x2b8   :  { %v240_v33 = vpack.c.bf16 %v235_v31, %v235_v31  ;;  %v393_v31 = vrot.slane %v335_v11, %v392_v24 }
 0x2ba   :  { %722 = vmatmul.mubr.msk.bf16.vlgmr.msra.gmra.mrb[4].mxu1 %vm125_vm2, %v240_v33 }
 0x2bb   :  { %737 = vmatprep.mubr.msk.bf16.mxu1 %vm850_vm0, %v849_v0  ;;  %734 = vmatpush3.bf16.msra.mxu1 %v781_v5 }
 0x2bc   :  { %735 = vmatprep.subr.bf16.mxu1 %v849_v0 }
 0x38d   :  { %v295_v35 = vpop.f32.mrb[4].mxu1 }
 0x38e   :  { %v938_v36 = vadd.f32 %v663_v34, %v295_v35  ;;  %v723_v37 = vpop.f32.mrb[5].mxu1  ;;  %v403_v34 = vrot.slane %v335_v11, %v402_v27  ;;  %v412_v35 = vsub.s32 7, %v955_v7 }
 0x38f   :  { %v298_v38 = vpop.f32.mrb[6].mxu1 }
 0x390   :  { %v724_v39 = vpop.f32.mrb[7].mxu1  ;;  %v302_v40 = vsel %vm301_vm3, %v938_v36, -inf }
 0x391   :  { %303 = vmax.xlane.f32.xlu0 %v302_v40 }
 0x41e   :  { %v942_v43 = vpop.xlane.xlu0 %303 }
 0x41f   :  { %vm315_vm4 = vcmp.ge.f32.partialorder %v938_v36, %v942_v43 }
 0x420   :  { %v316_v44 = vsel %vm315_vm4, %v314_v42, 8 }
 0x421   :  { %v317_v45 = vsel %vm301_vm3, %v316_v44, 2147483647 }
 0x422   :  { %v319_v46 = vshra.s32 %v317_v45, 16  ;;  %v318_v48 = vand.u32 65535, %v317_v45 }
 0x424   :  { %v321_v47 = vcvt.s32.f32 %v319_v46  ;;  %v320_v50 = vcvt.s32.f32 %v318_v48 }
 0x426   :  { %322 = vmin.xlane.f32.xlu0 %v321_v47 }
 0x4b3   :  { %v323_v49 = vpop.xlane.xlu0 %322 }
 0x4b4   :  { %vm324_vm5 = vcmp.eq.f32.partialorder %v321_v47, %v323_v49  ;;  %v329_v54 = vcvt.f32.s32 %v323_v49 }
 0x4b5   :  { %v325_v51 = vsel %vm324_vm5, %v320_v50, inf }
 0x4b6   :  { %326 = vmin.xlane.f32.xlu1 %v325_v51  ;;  %v330_v56 = vshll.u32 %v329_v54, 16 }
 0x543   :  { %v327_v55 = vpop.xlane.xlu1 %326 }
 0x544   :  { %v328_v57 = vcvt.f32.s32 %v327_v55 }
 0x546   :  { %v948_v58 = vadd.s32 %v330_v56, %v328_v57  ;;  %v782_v56 = vld [vmem:[#allocation2 + $0x50] sm:$0xff]   ;;  %v669_v57 = vld [vmem:[#allocation4 + $0x20] ss:$0 sm:$0xff] }
 0x547   :  { %736 = vmatpush3.bf16.msra.mxu1 %v782_v56 }
 0x548   :  { %vm332_vm6 = vcmp.eq.s32.totalorder %v314_v42, %v948_v58  ;;  %v413_v42 = vrot.slane %v335_v11, %v412_v35 }
 0x549   :  { %v667_v59 = vsel %vm332_vm6, 1.0, %v849_v0  ;;  %v372_v0 = vsub.s32 3, %v955_v7 }
 0x54a   :  { %347 = vperm.xlu0 %760, %v667_v59   ;;  %338 = vperm.xlu1 %759, %v667_v59  }
 0x54b   :  { %v373_v23 = vrot.slane %v335_v11, %v372_v0 }
 0x54e   :  { %761 = vset.pattern.permute.xlu1 %v853_v60  ;;  %769 = vset.pattern.permute.xlu0 %v853_v60 }
 0x54f   :  { %357 = vperm.xlu1 %761, %v667_v59  }
 0x553   :  { %762 = vset.pattern.permute.xlu1 %v854_v61 }
 0x554   :  { %367 = vperm.xlu1 %762, %v667_v59  }
 0x558   :  { %763 = vset.pattern.permute.xlu1 %v855_v62 }
 0x559   :  { %377 = vperm.xlu1 %763, %v667_v59  }
 0x55d   :  { %764 = vset.pattern.permute.xlu1 %v856_v63 }
 0x55e   :  { %387 = vperm.xlu1 %764, %v667_v59  }
 0x562   :  { %765 = vset.pattern.permute.xlu1 %v857_v1 }
 0x563   :  { %397 = vperm.xlu1 %765, %v667_v59  }
 0x567   :  { %766 = vset.pattern.permute.xlu1 %v858_v2 }
 0x568   :  { %407 = vperm.xlu1 %766, %v667_v59  }
 0x56c   :  { %767 = vset.pattern.permute.xlu1 %v852_v53 }
 0x5c9   :  { %v339_v6 = vpop.permute.xlu1 %338  ;;  %v348_v16 = vpop.permute.xlu0 %347 }
 0x5ca   :  { %v354_v20 = vmul.f32 %v353_v14, %v348_v16  ;;  %v345_v21 = vmul.f32 %v344_v15, %v339_v6  ;;  %v677_v14 = vld [vmem:[#allocation4 + $0x40] ss:$0 sm:$0xff]  ;;  %v305_v15 = vsub.f32 %v938_v36, %v942_v43 }
 0x5cc   :  { %v355_v29 = vadd.f32 %v354_v20, %v345_v21  ;;  %v306_v16 = vmul.f32 1.442695, %v305_v15 }
 0x5ce   :  { %v358_v8 = vpop.permute.xlu1 %357 }
 0x5cf   :  { %v364_v25 = vmul.f32 %v363_v17, %v358_v8 }
 0x5d1   :  { %v365_v32 = vadd.f32 %v364_v25, %v355_v29 }
 0x5d3   :  { %v368_v12 = vpop.permute.xlu1 %367 }
 0x5d4   :  { %v374_v30 = vmul.f32 %v373_v23, %v368_v12 }
 0x5d6   :  { %v375_v37 = vadd.f32 %v374_v30, %v365_v32 }
 0x5d8   :  { %v378_v19 = vpop.permute.xlu1 %377 }
 0x5d9   :  { %v384_v33 = vmul.f32 %v383_v26, %v378_v19  ;;  %v555_v19 = vld [vmem:[#allocation4 + $0x38] sm:$0xf] }
 0x5da   :  { %v588_v23 = vrot.slane %v555_v19, %v352_v9  ;;  %v602_v36 = vrot.slane %v555_v19, %v362_v13  ;;  %v616_v26 = vrot.slane %v555_v19, %v372_v0 }
 0x5db   :  { %v385_v40 = vadd.f32 %v384_v33, %v375_v37 }
 0x5dd   :  { %v388_v28 = vpop.permute.xlu1 %387 }
 0x5de   :  { %v394_v38 = vmul.f32 %v393_v31, %v388_v28 }
 0x5e0   :  { %v395_v44 = vadd.f32 %v394_v38, %v385_v40 }
 0x5e2   :  { %v398_v39 = vpop.permute.xlu1 %397 }
 0x5e3   :  { %v404_v41 = vmul.f32 %v403_v34, %v398_v39 }
 0x5e5   :  { %v405_v46 = vadd.f32 %v404_v41, %v395_v44  ;;  %v624_v41 = vcvt.s32.f32 %v948_v58 }
 0x5e7   :  { %v408_v45 = vpop.permute.xlu1 %407 }
 0x5e8   :  { %v414_v47 = vmul.f32 %v413_v42, %v408_v45 }
 0x5ea   :  { %v973_v48 = vadd.f32 %v414_v47, %v405_v46 }
 0x5ec   :  { %v668_v49 = vmul.f32 -1.442695, %v973_v48 }
 0x5ee   :  { %783 = vpow2.f32 %v668_v49 }
 0x5f8   :  { %v784_v50 = vpop.eup %783 }
 0x5f9   :  { %v419_v51 = vadd.f32 1.0, %v784_v50 }
 0x5fb   :  { %785 = vrcp.f32 %v419_v51 }
 0x605   :  { %v786_v53 = vpop.eup %785 }
 0x606   :  { %v422_v54 = vmul.f32 %v786_v53, %v927_v22 }
 0x608   :  { %v427_v55 = vpack.c.bf16 %v422_v54, %v422_v54 }
 0x60a   :  { %730 = vmatmul.mubr.msk.bf16.vlgmr.msra.gmra.mrb[8].mxu0 %vm125_vm2, %v427_v55 }
 0x6dd   :  { %v482_v59 = vpop.f32.mrb[8].mxu0 }
 0x6de   :  { %v483_v60 = vadd.f32 %v669_v57, %v482_v59  ;;  %v731_v62 = vpop.f32.mrb[9].mxu0 }
 0x6df   :  { %v485_v63 = vpop.f32.mrb[10].mxu0 }
 0x6e0   :  { %v488_v1 = vmax.f32 %v483_v60, 0.0  ;;  %v732_v2 = vpop.f32.mrb[11].mxu0 }
 0x6e2   :  { %v493_v3 = vpack.c.bf16 %v488_v1, %v488_v1 }
 0x6e4   :  { %738 = vmatmul.mubr.msk.bf16.vlgmr.msra.gmra.mrb[8].mxu1 %vm125_vm2, %v493_v3 }
 0x7b7   :  { %v548_v5 = vpop.f32.mrb[8].mxu1 }
 0x7b8   :  { %v549_v6 = vadd.f32 %v673_v4, %v548_v5  ;;  %v739_v8 = vpop.f32.mrb[9].mxu1 }
 0x7b9   :  { %v551_v22 = vpop.f32.mrb[10].mxu1 }
 0x7ba   :  { %787 = vtanh.f32 %v549_v6  ;;  %v740_v11 = vpop.f32.mrb[11].mxu1 }
 0x7bb   :  { %789 = vpow2.f32 %v306_v16 }
 0x7c4   :  { %v788_v12 = vpop.eup %787 }
 0x7c5   :  { %596 = vperm.xlu0 %769, %v788_v12   ;;  %568 = vperm.xlu1 %767, %v788_v12   ;;  %v790_v17 = vpop.eup %789 }
 0x7c6   :  { %v308_v18 = vsel %vm301_vm3, %v790_v17, 0.0 }
 0x7c9   :  { %768 = vset.pattern.permute.xlu1 %v851_v52  ;;  %562 = vrot.lane.b32.xlu0 %v677_v14, %s859_s0  ;;  %v574_v52 = vrot.slane %v555_v19, %v343_v10 }
 0x7ca   :  { %582 = vperm.xlu1 %768, %v788_v12   ;;  %771 = vset.pattern.permute.xlu0 %v854_v61 }
 0x7ce   :  { %770 = vset.pattern.permute.xlu1 %v854_v61 }
 0x7cf   :  { %610 = vperm.xlu1 %770, %v788_v12  }
 0x7f3   :  { %309 = vadd.xlane.f32.xlu1 %v308_v18 }
 0x844   :  { %v569_v20 = vpop.permute.xlu1 %568  ;;  %v597_v24 = vpop.permute.xlu0 %596 }
 0x845   :  { %v575_v21 = vmul.f32 %v574_v52, %v569_v20  ;;  %v603_v25 = vmul.f32 %v602_v36, %v597_v24 }
 0x847   :  { %577 = vrot.lane.b32.xlu0 %v575_v21, %s859_s0 }
 0x848   :  { %v563_v30 = vpop.permute.xlu0 %562 }
 0x849   :  { %v583_v61 = vpop.permute.xlu1 %582  ;;  %v565_v32 = vadd.f32 %v563_v30, %v973_v48 }
 0x84a   :  { %v589_v43 = vmul.f32 %v588_v23, %v583_v61 }
 0x84c   :  { %591 = vrot.lane.b32.xlu0 %v589_v43, %s859_s0 }
 0x84e   :  { %v611_v27 = vpop.permute.xlu1 %610 }
 0x84f   :  { %v617_v10 = vmul.f32 %v616_v26, %v611_v27 }
 0x850   :  { %605 = vrot.lane.b32.xlu0 %v603_v25, %s859_s0 }
 0x854   :  { %619 = vrot.lane.b32.xlu0 %v617_v10, %s859_s0 }
 0x880   :  { %v310_v28 = vpop.xlane.xlu1 %309 }
 0x881   :  { %791 = vrcp.f32 %v310_v28 }
 0x88b   :  { %v792_v29 = vpop.eup %791 }
 0x88c   :  { %v312_v9 = vmul.f32 %v792_v29, %v790_v17 }
 0x88e   :  { %630 = vrot.lane.b32.xlu0 %v312_v9, %s845_s23 }
 0x8b9   :  { %v578_v31 = vpop.permute.xlu0 %577 }
 0x8ba   :  { %v580_v33 = vadd.f32 %v578_v31, %v565_v32 }
 0x8be   :  { %v592_v13 = vpop.permute.xlu0 %591 }
 0x8bf   :  { %v594_v35 = vadd.f32 %v592_v13, %v580_v33 }
 0x8c2   :  { %v606_v34 = vpop.permute.xlu0 %605 }
 0x8c3   :  { %v608_v7 = vadd.f32 %v606_v34, %v594_v35 }
 0x8c6   :  { %v620_v0 = vpop.permute.xlu0 %619 }
 0x8c7   :  { %v622_v37 = vadd.f32 %v620_v0, %v608_v7 }
 0x8c9   :  { %793 = vtanh.f32 %v622_v37 }
 0x8d3   :  { %v794_v38 = vpop.eup %793 }
 0x8d4   :  { %626 = vrot.lane.b32.xlu0 %v794_v38, %s860_s2 }
 0x8d8   :  { %634 = vrot.lane.b32.xlu0 %v549_v6, %s848_s9 }
 0x900   :  { %v631_v39 = vpop.permute.xlu0 %630 }
 0x946   :  { %v627_v40 = vpop.permute.xlu0 %626 }
 0x947   :  { %v638_v42 = vsel %vm637_vm7, %v627_v40, %v631_v39 }
 0x94a   :  { %v635_v44 = vpop.permute.xlu0 %634 }
 0x94b   :  { %v640_v45 = vsel %vm639_vm8, %v638_v42, %v635_v44 }
 0x94c   :  { %v642_v46 = vsel %vm641_vm9, %v640_v45, %v624_v41 }
 0x94d   :  { %v644_v47 = vsel %vm643_vm10, %v642_v46, 0.0 }
 0x94e   :  { %645 = vst [vmem:[%s1003_s3] sm:$0xff] %v644_v47 }
 0x94f   :  { %650 = vsyncpa [#allocation3], 1 }
 0x950   :  { %651 = vsyncpa [#allocation5], 1 }

</bundles_post_ra>
